<compile_context>
chip_gen: v6e
topology: v6e:2x2x1
jax: 0.10.0
libtpu: 0.0.40
codegen_flags: <defaults>
</compile_context>

<pallas_src>
import jax
import jax.numpy as jnp
from jax.experimental import pallas as pl
from jax.experimental.pallas import tpu as pltpu

LANES = 128
MAX_TILE_ROWS = 2048  # rows of the 2D slab per grid step (1 MiB f32 at 128 lanes)


def _num_parallel_cores():
    """2 only on generations whose Pallas grid spans two TensorCores (v7x)."""
    try:
        kind = jax.devices()[0].device_kind.lower()
    except Exception:
        return 1
    if ("v7" in kind) or ("7x" in kind):
        return 2
    return 1


def _to_2d(x):
    """Present `x` as a lane-friendly 2D slab with no extra HBM copy if possible."""
    n = x.size
    if n % LANES == 0:
        return jnp.reshape(x, (-1, LANES))            # free (bitcast) reshape
    if x.ndim >= 2 and x.shape[-1] >= LANES:
        return jnp.reshape(x, (-1, x.shape[-1]))      # natural last dim as lanes, no pad
    # Last resort (tiny / 1-D shapes): <=127-element zero pad. Zero padding is
    # self-masking in every mode (gt==0 / mask==0 / sl1(0,0)==0).
    flat = jnp.reshape(x, (-1,))
    flat = jnp.pad(flat, (0, (-n) % LANES))
    return jnp.reshape(flat, (-1, LANES))


def _make_sl1_kernel(mode, rows_valid, tile_r, lanes, steps_per_core, last_blk,
                     beta=1.0):
    """mode: 'derive' (mask = gt > 0), 'explicit' (mask input), 'all' (no mask)."""
    need_count = mode != "all"
    inv2beta = 0.5 / beta
    half_beta = 0.5 * beta

    def smooth_l1(pred, gt):
        d = pred - gt
        ad = jnp.abs(d)
        return jnp.where(ad < beta, inv2beta * d * d, ad - half_beta)

    def body(pred_ref, gt_ref, mask_ref, sum_ref, cnt_ref):
        i = pl.program_id(1)
        blk = pl.program_id(0) * steps_per_core + i  # unclamped logical block

        # Output blocks double as per-core accumulators (resident across axis 1).
        @pl.when(i == 0)
        def _():
            sum_ref[...] = jnp.zeros_like(sum_ref)
            if need_count:
                cnt_ref[...] = jnp.zeros_like(cnt_ref)

        pred = pred_ref[...].astype(jnp.float32)
        gt = gt_ref[...].astype(jnp.float32)

        def data_mask():
            if mode == "derive":
                return gt > 0.0
            if mode == "explicit":
                return mask_ref[...] != 0
            return None  # 'all'

        def accumulate(m):
            sl1 = smooth_l1(pred, gt)
            contrib = sl1 if m is None else jnp.where(m, sl1, 0.0)
            sum_ref[...] += jnp.sum(contrib, axis=0, keepdims=True)
            if need_count:
                cnt_ref[...] += jnp.sum(m.astype(jnp.float32), axis=0,
                                        keepdims=True)

        # Fast path: interior blocks never contain Pallas-padded rows, so the
        # per-element row-index math is skipped entirely.
        @pl.when(blk < last_blk)
        def _():
            accumulate(data_mask())

        # Tail path: last real (ragged) block + any clamped duplicate blocks.
        @pl.when(blk >= last_blk)
        def _():
            row = jax.lax.broadcasted_iota(jnp.int32, (tile_r, lanes), 0)
            valid = (blk * tile_r + row) < rows_valid
            dm = data_mask()
            m = valid if dm is None else jnp.logical_and(dm, valid)
            accumulate(m)

    if mode == "explicit":
        def kernel(pred_ref, gt_ref, mask_ref, sum_ref, cnt_ref):
            body(pred_ref, gt_ref, mask_ref, sum_ref, cnt_ref)
    elif mode == "derive":
        def kernel(pred_ref, gt_ref, sum_ref, cnt_ref):
            body(pred_ref, gt_ref, None, sum_ref, cnt_ref)
    else:  # 'all'
        def kernel(pred_ref, gt_ref, sum_ref):
            body(pred_ref, gt_ref, None, sum_ref, None)
    return kernel


class SL1Loss:
    """JAX/Pallas port of models/sinnerf.py::SL1Loss (forward only)."""

    def __init__(self, levels=3):
        self.levels = levels  # unused in forward, kept for parity

    def __call__(self, depth_pred, depth_gt, mask=None, useMask=True):
        n = depth_pred.size  # static true element count

        if mask is None and useMask:
            mode = "derive"
        elif mask is not None:
            mode = "explicit"
        else:
            mode = "all"  # PyTorch `x[None]` indexing: mean over all elements

        pred2d = _to_2d(depth_pred)
        gt2d = _to_2d(depth_gt)
        rows, lanes = pred2d.shape

        tile_r = rows if rows <= MAX_TILE_ROWS else MAX_TILE_ROWS
        total_steps = pl.cdiv(rows, tile_r)
        num_cores = _num_parallel_cores() if total_steps >= 2 else 1
        num_cores = min(num_cores, total_steps)
        spc = pl.cdiv(total_steps, num_cores)  # steps per core
        last_blk = total_steps - 1
        grid = (num_cores, spc)

        if num_cores * spc == total_steps:
            def in_map(c, i):
                return (c * spc + i, 0)
        else:
            # Clamp out-of-range logical blocks onto the last real block; the
            # in-kernel tail mask (built from the *unclamped* index) zeroes
            # their contribution, so no double counting.
            def in_map(c, i):
                return (jnp.minimum(c * spc + i, last_blk), 0)

        in_spec = pl.BlockSpec((tile_r, lanes), in_map)
        # (None, 1, lanes): leading core axis squeezed; kernel sees (1, lanes).
        out_spec = pl.BlockSpec((None, 1, lanes), lambda c, i: (c, 0, 0))
        out_struct = jax.ShapeDtypeStruct((num_cores, 1, lanes), jnp.float32)

        inputs = [pred2d, gt2d]
        in_specs = [in_spec, in_spec]
        if mode == "explicit":
            m = mask
            if m.dtype == jnp.bool_:
                m = m.astype(jnp.int8)  # 1-byte HBM stream; compare !=0 in-kernel
            inputs.append(_to_2d(m))
            in_specs.append(in_spec)

        kernel = _make_sl1_kernel(mode, rows, tile_r, lanes, spc, last_blk)
        cparams = pltpu.CompilerParams(
            dimension_semantics=("parallel", "arbitrary"))

        if mode == "all":
            sums = pl.pallas_call(
                kernel,
                grid=grid,
                in_specs=in_specs,
                out_specs=out_spec,
                out_shape=out_struct,
                compiler_params=cparams,
            )(*inputs)
            return jnp.sum(sums) / jnp.float32(n)

        sums, cnts = pl.pallas_call(
            kernel,
            grid=grid,
            in_specs=in_specs,
            out_specs=(out_spec, out_spec),
            out_shape=(out_struct, out_struct),
            compiler_params=cparams,
        )(*inputs)
        # NaN when the mask selects nothing -- matches PyTorch's empty mean.
        return jnp.sum(sums) / jnp.sum(cnts)


# ----------------------------- reference & tests -----------------------------

def _smooth_l1(d, beta=1.0):
    ad = jnp.abs(d)
    return jnp.where(ad < beta, 0.5 * d * d / beta, ad - 0.5 * beta)


def _reference(depth_pred, depth_gt, mask=None, useMask=True):
    if mask is None and useMask:
        m = depth_gt > 0
    elif mask is not None:
        m = mask != 0
    else:
        m = jnp.ones(depth_gt.shape, dtype=bool)
    mf = m.astype(jnp.float32)
    sl1 = _smooth_l1(depth_pred.astype(jnp.float32) - depth_gt.astype(jnp.float32))
    return jnp.sum(sl1 * mf) / jnp.sum(mf)


if __name__ == "__main__":
    key = jax.random.PRNGKey(0)
    loss_fn = SL1Loss(levels=3)

    def check(pred, gt, mask=None, useMask=True, name=""):
        out = jax.block_until_ready(loss_fn(pred, gt, mask=mask, useMask=useMask))
        ref = jax.block_until_ready(_reference(pred, gt, mask=mask, useMask=useMask))
        assert jnp.allclose(out, ref, rtol=1e-4, atol=1e-6), (name, out, ref)

    # 1) Small NCHW depth maps, derived mask (gt > 0) -- the common path.
    k1, k2, k3, key = jax.random.split(key, 4)
    B, C, H, W = 2, 1, 16, 16
    pred = jax.random.uniform(k1, (B, C, H, W), jnp.float32, 0.0, 4.0)
    gt = jax.random.uniform(k2, (B, C, H, W), jnp.float32, 0.0, 4.0)
    gt = jnp.where(jax.random.uniform(k3, (B, C, H, W)) < 0.3, 0.0, gt)
    check(pred, gt, name="derive_small")

    # 2) Explicit boolean mask path (streamed as int8).
    k4, key = jax.random.split(key)
    emask = jax.random.uniform(k4, (B, C, H, W)) < 0.5
    check(pred, gt, mask=emask, name="explicit_mask")

    # 3) mask=None, useMask=False -> mean over all elements (static count).
    check(pred, gt, mask=None, useMask=False, name="no_mask")

    # 4) Non-128-divisible size with a wide last dim: exercises the pad-free
    #    natural (rows, last_dim) slab.
    k5, k6, k7, key = jax.random.split(key, 4)
    shape = (1, 1, 130, 1030)
    pred_l = jax.random.uniform(k5, shape, jnp.float32, 0.0, 4.0)
    gt_l = jax.random.uniform(k6, shape, jnp.float32, 0.0, 4.0)
    gt_l = jnp.where(jax.random.uniform(k7, shape) < 0.3, 0.0, gt_l)
    check(pred_l, gt_l, name="derive_natural2d")

    # 5) 128-divisible size larger than one block: exercises the multi-step
    #    grid, the interior fast path and the ragged-tail block mask.
    k8, k9, k10, k11, key = jax.random.split(key, 5)
    shape = (1, 1, 520, 512)  # 266,240 elems -> rows=2080 -> 2 blocks of 2048
    pred_m = jax.random.uniform(k8, shape, jnp.float32, 0.0, 4.0)
    gt_m = jax.random.uniform(k9, shape, jnp.float32, 0.0, 4.0)
    gt_m = jnp.where(jax.random.uniform(k10, shape) < 0.3, 0.0, gt_m)
    check(pred_m, gt_m, name="derive_multiblock")
    emask_m = jax.random.uniform(k11, shape) < 0.5
    check(pred_m, gt_m, mask=emask_m, name="explicit_multiblock")

    # 6) Tiny shape with small last dim: exercises the zero-pad fallback.
    k12, k13, k14, key = jax.random.split(key, 4)
    shape = (3, 1, 7, 5)  # 105 elems -> padded to one (1, 128) row
    pred_t = jax.random.uniform(k12, shape, jnp.float32, 0.0, 4.0)
    gt_t = jax.random.uniform(k13, shape, jnp.float32, 0.0, 4.0)
    gt_t = jnp.where(jax.random.uniform(k14, shape) < 0.3, 0.0, gt_t)
    check(pred_t, gt_t, name="derive_pad_fallback")
    check(pred_t, gt_t, mask=None, useMask=False, name="no_mask_pad_fallback")

    print("KERNEL_OK")
</pallas_src>

<mosaic_0001>
module attributes {stable_mosaic.version = 11 : i64} {
  func.func @kernel(%arg0: i32, %arg1: i32, %arg2: memref<4x128xf32, #tpu.memory_space<vmem>>, %arg3: memref<4x128xf32, #tpu.memory_space<vmem>>, %arg4: memref<1x1x128xf32, #tpu.memory_space<vmem>>, %arg5: memref<1x1x128xf32, #tpu.memory_space<vmem>>) attributes {dimension_semantics = [#tpu.dimension_semantics<parallel>, #tpu.dimension_semantics<arbitrary>], iteration_bounds = array<i64: 1, 1>, scalar_prefetch = 0 : i64, scratch_operands = 0 : i64, tpu.core_type = #tpu.core_type<tc>, window_params = [{transform_indices = @transform_0, window_bounds = array<i64: 4, 128>}, {transform_indices = @transform_1, window_bounds = array<i64: 4, 128>}, {transform_indices = @transform_2, window_bounds = array<i64: 1, 1, 128>}, {transform_indices = @transform_3, window_bounds = array<i64: 1, 1, 128>}]} {
    %c1_i32 = arith.constant 1 : i32
    %0 = arith.muli %arg0, %c1_i32 : i32
    %1 = arith.addi %0, %arg1 : i32
    %c0_i32 = arith.constant 0 : i32
    %2 = arith.cmpi eq, %arg1, %c0_i32 : i32
    %3 = arith.extui %2 : i1 to i32
    %c0_i32_0 = arith.constant 0 : i32
    %4 = arith.cmpi ne, %3, %c0_i32_0 : i32
    scf.if %4 {
      %cst = arith.constant 0.000000e+00 : f32
      %13 = vector.broadcast %cst : f32 to vector<1x128xf32>
      %c0_8 = arith.constant 0 : index
      %c0_9 = arith.constant 0 : index
      %c0_10 = arith.constant 0 : index
      %14 = vector.load %arg4[%c0_8, %c0_9, %c0_10] : memref<1x1x128xf32, #tpu.memory_space<vmem>>, vector<1x1x128xf32>
      %15 = vector.shape_cast %14 : vector<1x1x128xf32> to vector<1x128xf32>
      %16 = vector.shape_cast %13 : vector<1x128xf32> to vector<1x1x128xf32>
      tpu.vector_store %arg4[%c0_8, %c0_9, %c0_10], %16 {strides = array<i32>} : memref<1x1x128xf32, #tpu.memory_space<vmem>>, vector<1x1x128xf32>,
      %cst_11 = arith.constant 0.000000e+00 : f32
      %17 = vector.broadcast %cst_11 : f32 to vector<1x128xf32>
      %c0_12 = arith.constant 0 : index
      %c0_13 = arith.constant 0 : index
      %c0_14 = arith.constant 0 : index
      %18 = vector.load %arg5[%c0_12, %c0_13, %c0_14] : memref<1x1x128xf32, #tpu.memory_space<vmem>>, vector<1x1x128xf32>
      %19 = vector.shape_cast %18 : vector<1x1x128xf32> to vector<1x128xf32>
      %20 = vector.shape_cast %17 : vector<1x128xf32> to vector<1x1x128xf32>
      tpu.vector_store %arg5[%c0_12, %c0_13, %c0_14], %20 {strides = array<i32>} : memref<1x1x128xf32, #tpu.memory_space<vmem>>, vector<1x1x128xf32>,
    } else {
    }
    %c0 = arith.constant 0 : index
    %c0_1 = arith.constant 0 : index
    %5 = vector.load %arg2[%c0, %c0_1] : memref<4x128xf32, #tpu.memory_space<vmem>>, vector<4x128xf32>
    %c0_2 = arith.constant 0 : index
    %c0_3 = arith.constant 0 : index
    %6 = vector.load %arg3[%c0_2, %c0_3] : memref<4x128xf32, #tpu.memory_space<vmem>>, vector<4x128xf32>
    %c0_i32_4 = arith.constant 0 : i32
    %7 = arith.cmpi slt, %1, %c0_i32_4 : i32
    %8 = arith.extui %7 : i1 to i32
    %c0_i32_5 = arith.constant 0 : i32
    %9 = arith.cmpi ne, %8, %c0_i32_5 : i32
    scf.if %9 {
      %cst = arith.constant 0.000000e+00 : f32
      %13 = vector.broadcast %cst : f32 to vector<4x128xf32>
      %14 = arith.cmpf ogt, %6, %13 : vector<4x128xf32>
      %15 = arith.subf %5, %6 : vector<4x128xf32>
      %16 = math.absf %15 : vector<4x128xf32>
      %cst_8 = arith.constant 1.000000e+00 : f32
      %17 = vector.broadcast %cst_8 : f32 to vector<4x128xf32>
      %18 = arith.cmpf olt, %16, %17 : vector<4x128xf32>
      %cst_9 = arith.constant 5.000000e-01 : f32
      %19 = vector.broadcast %cst_9 : f32 to vector<4x128xf32>
      %20 = arith.mulf %19, %15 : vector<4x128xf32>
      %21 = arith.mulf %20, %15 : vector<4x128xf32>
      %cst_10 = arith.constant 5.000000e-01 : f32
      %22 = vector.broadcast %cst_10 : f32 to vector<4x128xf32>
      %23 = arith.subf %16, %22 : vector<4x128xf32>
      %24 = arith.select %18, %21, %23 : vector<4x128xi1>, vector<4x128xf32>
      %cst_11 = arith.constant 0.000000e+00 : f32
      %25 = vector.broadcast %cst_11 : f32 to vector<4x128xf32>
      %26 = arith.select %14, %24, %25 : vector<4x128xi1>, vector<4x128xf32>
      %c0_12 = arith.constant 0 : index
      %c0_13 = arith.constant 0 : index
      %c0_14 = arith.constant 0 : index
      %27 = vector.load %arg4[%c0_12, %c0_13, %c0_14] : memref<1x1x128xf32, #tpu.memory_space<vmem>>, vector<1x1x128xf32>
      %28 = vector.shape_cast %27 : vector<1x1x128xf32> to vector<1x128xf32>
      %cst_15 = arith.constant dense<0.000000e+00> : vector<128xf32>
      %29 = vector.multi_reduction <add>, %26, %cst_15 [0] : vector<4x128xf32> to vector<128xf32>
      %30 = vector.shape_cast %29 : vector<128xf32> to vector<1x128xf32>
      %31 = arith.addf %28, %30 : vector<1x128xf32>
      %c0_16 = arith.constant 0 : index
      %c0_17 = arith.constant 0 : index
      %c0_18 = arith.constant 0 : index
      %32 = vector.load %arg4[%c0_16, %c0_17, %c0_18] : memref<1x1x128xf32, #tpu.memory_space<vmem>>, vector<1x1x128xf32>
      %33 = vector.shape_cast %32 : vector<1x1x128xf32> to vector<1x128xf32>
      %34 = vector.shape_cast %31 : vector<1x128xf32> to vector<1x1x128xf32>
      tpu.vector_store %arg4[%c0_16, %c0_17, %c0_18], %34 {strides = array<i32>} : memref<1x1x128xf32, #tpu.memory_space<vmem>>, vector<1x1x128xf32>,
      %c0_19 = arith.constant 0 : index
      %c0_20 = arith.constant 0 : index
      %c0_21 = arith.constant 0 : index
      %35 = vector.load %arg5[%c0_19, %c0_20, %c0_21] : memref<1x1x128xf32, #tpu.memory_space<vmem>>, vector<1x1x128xf32>
      %36 = vector.shape_cast %35 : vector<1x1x128xf32> to vector<1x128xf32>
      %37 = arith.extui %14 : vector<4x128xi1> to vector<4x128xi32>
      %38 = arith.sitofp %37 : vector<4x128xi32> to vector<4x128xf32>
      %cst_22 = arith.constant dense<0.000000e+00> : vector<128xf32>
      %39 = vector.multi_reduction <add>, %38, %cst_22 [0] : vector<4x128xf32> to vector<128xf32>
      %40 = vector.shape_cast %39 : vector<128xf32> to vector<1x128xf32>
      %41 = arith.addf %36, %40 : vector<1x128xf32>
      %c0_23 = arith.constant 0 : index
      %c0_24 = arith.constant 0 : index
      %c0_25 = arith.constant 0 : index
      %42 = vector.load %arg5[%c0_23, %c0_24, %c0_25] : memref<1x1x128xf32, #tpu.memory_space<vmem>>, vector<1x1x128xf32>
      %43 = vector.shape_cast %42 : vector<1x1x128xf32> to vector<1x128xf32>
      %44 = vector.shape_cast %41 : vector<1x128xf32> to vector<1x1x128xf32>
      tpu.vector_store %arg5[%c0_23, %c0_24, %c0_25], %44 {strides = array<i32>} : memref<1x1x128xf32, #tpu.memory_space<vmem>>, vector<1x1x128xf32>,
    } else {
    }
    %c0_i32_6 = arith.constant 0 : i32
    %10 = arith.cmpi sge, %1, %c0_i32_6 : i32
    %11 = arith.extui %10 : i1 to i32
    %c0_i32_7 = arith.constant 0 : i32
    %12 = arith.cmpi ne, %11, %c0_i32_7 : i32
    scf.if %12 {
      %13 = tpu.iota {dimensions = array<i32: 0>} : vector<4x128xi32>
      %c4_i32 = arith.constant 4 : i32
      %14 = arith.muli %1, %c4_i32 : i32
      %15 = vector.broadcast %14 : i32 to vector<4x128xi32>
      %16 = arith.addi %15, %13 : vector<4x128xi32>
      %c4_i32_8 = arith.constant 4 : i32
      %17 = vector.broadcast %c4_i32_8 : i32 to vector<4x128xi32>
      %18 = arith.cmpi slt, %16, %17 : vector<4x128xi32>
      %cst = arith.constant 0.000000e+00 : f32
      %19 = vector.broadcast %cst : f32 to vector<4x128xf32>
      %20 = arith.cmpf ogt, %6, %19 : vector<4x128xf32>
      %21 = arith.andi %20, %18 : vector<4x128xi1>
      %22 = arith.subf %5, %6 : vector<4x128xf32>
      %23 = math.absf %22 : vector<4x128xf32>
      %cst_9 = arith.constant 1.000000e+00 : f32
      %24 = vector.broadcast %cst_9 : f32 to vector<4x128xf32>
      %25 = arith.cmpf olt, %23, %24 : vector<4x128xf32>
      %cst_10 = arith.constant 5.000000e-01 : f32
      %26 = vector.broadcast %cst_10 : f32 to vector<4x128xf32>
      %27 = arith.mulf %26, %22 : vector<4x128xf32>
      %28 = arith.mulf %27, %22 : vector<4x128xf32>
      %cst_11 = arith.constant 5.000000e-01 : f32
      %29 = vector.broadcast %cst_11 : f32 to vector<4x128xf32>
      %30 = arith.subf %23, %29 : vector<4x128xf32>
      %31 = arith.select %25, %28, %30 : vector<4x128xi1>, vector<4x128xf32>
      %cst_12 = arith.constant 0.000000e+00 : f32
      %32 = vector.broadcast %cst_12 : f32 to vector<4x128xf32>
      %33 = arith.select %21, %31, %32 : vector<4x128xi1>, vector<4x128xf32>
      %c0_13 = arith.constant 0 : index
      %c0_14 = arith.constant 0 : index
      %c0_15 = arith.constant 0 : index
      %34 = vector.load %arg4[%c0_13, %c0_14, %c0_15] : memref<1x1x128xf32, #tpu.memory_space<vmem>>, vector<1x1x128xf32>
      %35 = vector.shape_cast %34 : vector<1x1x128xf32> to vector<1x128xf32>
      %cst_16 = arith.constant dense<0.000000e+00> : vector<128xf32>
      %36 = vector.multi_reduction <add>, %33, %cst_16 [0] : vector<4x128xf32> to vector<128xf32>
      %37 = vector.shape_cast %36 : vector<128xf32> to vector<1x128xf32>
      %38 = arith.addf %35, %37 : vector<1x128xf32>
      %c0_17 = arith.constant 0 : index
      %c0_18 = arith.constant 0 : index
      %c0_19 = arith.constant 0 : index
      %39 = vector.load %arg4[%c0_17, %c0_18, %c0_19] : memref<1x1x128xf32, #tpu.memory_space<vmem>>, vector<1x1x128xf32>
      %40 = vector.shape_cast %39 : vector<1x1x128xf32> to vector<1x128xf32>
      %41 = vector.shape_cast %38 : vector<1x128xf32> to vector<1x1x128xf32>
      tpu.vector_store %arg4[%c0_17, %c0_18, %c0_19], %41 {strides = array<i32>} : memref<1x1x128xf32, #tpu.memory_space<vmem>>, vector<1x1x128xf32>,
      %c0_20 = arith.constant 0 : index
      %c0_21 = arith.constant 0 : index
      %c0_22 = arith.constant 0 : index
      %42 = vector.load %arg5[%c0_20, %c0_21, %c0_22] : memref<1x1x128xf32, #tpu.memory_space<vmem>>, vector<1x1x128xf32>
      %43 = vector.shape_cast %42 : vector<1x1x128xf32> to vector<1x128xf32>
      %44 = arith.extui %21 : vector<4x128xi1> to vector<4x128xi32>
      %45 = arith.sitofp %44 : vector<4x128xi32> to vector<4x128xf32>
      %cst_23 = arith.constant dense<0.000000e+00> : vector<128xf32>
      %46 = vector.multi_reduction <add>, %45, %cst_23 [0] : vector<4x128xf32> to vector<128xf32>
      %47 = vector.shape_cast %46 : vector<128xf32> to vector<1x128xf32>
      %48 = arith.addf %43, %47 : vector<1x128xf32>
      %c0_24 = arith.constant 0 : index
      %c0_25 = arith.constant 0 : index
      %c0_26 = arith.constant 0 : index
      %49 = vector.load %arg5[%c0_24, %c0_25, %c0_26] : memref<1x1x128xf32, #tpu.memory_space<vmem>>, vector<1x1x128xf32>
      %50 = vector.shape_cast %49 : vector<1x1x128xf32> to vector<1x128xf32>
      %51 = vector.shape_cast %48 : vector<1x128xf32> to vector<1x1x128xf32>
      tpu.vector_store %arg5[%c0_24, %c0_25, %c0_26], %51 {strides = array<i32>} : memref<1x1x128xf32, #tpu.memory_space<vmem>>, vector<1x1x128xf32>,
    } else {
    }
    return
  }
  func.func @transform_0(%arg0: i32, %arg1: i32) -> (i32, i32) {
    %c1_i32 = arith.constant 1 : i32
    %0 = arith.muli %arg0, %c1_i32 : i32
    %1 = arith.addi %0, %arg1 : i32
    %c0_i32 = arith.constant 0 : i32
    %c0_i32_0 = arith.constant 0 : i32
    return %1, %c0_i32 : i32, i32
  }
  func.func @transform_1(%arg0: i32, %arg1: i32) -> (i32, i32) {
    %c1_i32 = arith.constant 1 : i32
    %0 = arith.muli %arg0, %c1_i32 : i32
    %1 = arith.addi %0, %arg1 : i32
    %c0_i32 = arith.constant 0 : i32
    %c0_i32_0 = arith.constant 0 : i32
    return %1, %c0_i32 : i32, i32
  }
  func.func @transform_2(%arg0: i32, %arg1: i32) -> (i32, i32, i32) {
    %c0_i32 = arith.constant 0 : i32
    %c0_i32_0 = arith.constant 0 : i32
    %c0_i32_1 = arith.constant 0 : i32
    return %arg0, %c0_i32, %c0_i32_0 : i32, i32, i32
  }
  func.func @transform_3(%arg0: i32, %arg1: i32) -> (i32, i32, i32) {
    %c0_i32 = arith.constant 0 : i32
    %c0_i32_0 = arith.constant 0 : i32
    %c0_i32_1 = arith.constant 0 : i32
    return %arg0, %c0_i32, %c0_i32_0 : i32, i32, i32
  }
}

</mosaic_0001>

<bundles_post_ra>
// kernel: tpu_custom_call.1
= control target key start
LH: loop header
LB: loop body
LE: loop exit
PB: predicated region body
PF: predicated region fallthrough
CT: control target
= control target key end

     0   :  { %9 = vsyncpa [#allocation3], 0  ;;  %s299_s0 = inlined_call_operand.hbm [shape: f32[4,128], index: 0, kind: input, shape index: {}]   ;;  %s300_s1 = inlined_call_operand.hbm [shape: f32[4,128], index: 1, kind: input, shape index: {}]   ;;  %s301_s2 = inlined_call_operand.hbm [shape: f32[1,1,128], index: 2, kind: output, shape index: {0}]   ;;  %s302_s3 = inlined_call_operand.hbm [shape: f32[1,1,128], index: 3, kind: output, shape index: {1}]  }
   0x1   :  { %10 = vsyncpa [#allocation6], 0 }
   0x2   :  { %11 = vsyncpa [#allocation4], 0 }
   0x3   :  { %12 = vsyncpa [#allocation9], 0  ;;  %s262_s12 = smov [#allocation2]   ;;  %s263_s14 = smov [#allocation5]  }
   0x4   :  { %s22_s13 = sshll.u32 %s262_s12, 4  ;;  %s35_s15 = sshll.u32 %s263_s14, 4  ;;  %s23_s13 = int_to_ptr.vmem [resolvable:$true] %s22_s13  ;;  %s36_s15 = int_to_ptr.vmem [resolvable:$true] %s35_s15 }
   0x5   :  { %s182_s16 = scalar_lea.vmem %s23_s13, 64  ;;  %p187_p1 = scmp.lt.s32.totalorder %s23_s13, %s23_s13 }
   0x6   :  { %p183_p0 = scmp.ne.s32.totalorder %s23_s13, %s182_s16  ;;  %p188_p2 = scmp.lt.s32.totalorder %s182_s16, %s182_s16 }
   0x8   :  { %p189_p3 = por %p188_p2, %p187_p1 }
   0xa   :  { %p190_p4 = pnand %p189_p3, %p183_p0 }
   0xc   :  { %193 = shalt.err (!%p190_p4)
}
   0xd   :  { %25 = dma.hbm_to_vmem [thread:$0]  %s299_s0, 64, %s23_s13, [#allocation3]  }
   0xe   :  { %s202_s19 = scalar_lea.vmem %s36_s15, 64  ;;  %p207_p6 = scmp.lt.s32.totalorder %s36_s15, %s36_s15 }
   0xf   :  { %p203_p5 = scmp.ne.s32.totalorder %s36_s15, %s202_s19  ;;  %p208_p7 = scmp.lt.s32.totalorder %s202_s19, %s202_s19 }
  0x11   :  { %p209_p8 = por %p208_p7, %p207_p6 }
  0x13   :  { %p210_p9 = pnand %p209_p8, %p203_p5 }
  0x15   :  { %213 = shalt.err (!%p210_p9)
}
  0x16   :  { %38 = dma.hbm_to_vmem [thread:$0]  %s300_s1, 64, %s36_s15, [#allocation6]  }
  0x17   :  { %254 = dma.done.wait [#allocation3], 64  }
  0x18   :  { %255 = vsyncadd [#allocation3], 4294967232 }
  0x19   :  { %256 = dma.done.wait [#allocation6], 64  }
  0x1a   :  { %257 = vsyncadd [#allocation6], 4294967232  ;;  %v96_v0 = vlaneseq  ;;  %v264_v1 = vmov 0.0   ;;  %v54_v3 = vld [vmem:[#allocation2] sm:$0xf]  ;;  %vm113_vm2 = vcmask 1043456  }
  0x1b   :  { %52 = vst [vmem:[#allocation7] sm:$0x1] %v264_v1  ;;  %53 = vst [vmem:[#allocation8] sm:$0x1] %v264_v1  ;;  %v55_v4 = vld [vmem:[#allocation5] sm:$0xf] }
  0x1c   :  { %v97_v2 = vshrl.u32 %v96_v0, 7  ;;  %vm102_vm1 = vcmp.gt.f32.partialorder %v55_v4, 0.0  ;;  %v104_v5 = vsub.f32 %v54_v3, %v55_v4  ;;  %s265_s0 = smov [#allocation8]   ;;  %s266_s22 = smov [#allocation7]  }
  0x1d   :  { %s151_s1 = sshll.u32 %s265_s0, 4  ;;  %s141_s23 = sshll.u32 %s266_s22, 4  ;;  %s152_s1 = int_to_ptr.vmem [resolvable:$true] %s151_s1  ;;  %s142_s23 = int_to_ptr.vmem [resolvable:$true] %s141_s23 }
  0x1e   :  { %vm101_vm0 = vcmp.lt.s32.totalorder %v97_v2, 4  ;;  %v105_v6 = vand.u32 2147483647, %v104_v5  ;;  %v107_v7 = vmul.f32 0.5, %v104_v5  ;;  %s214_s24 = scalar_lea.vmem %s152_s1, 16  ;;  %s218_s25 = scalar_lea.vmem %s152_s1, 32 }
  0x1f   :  { %vm103_vm3 = vmand %vm102_vm1, %vm101_vm0  ;;  %p215_p10 = scmp.ne.s32.totalorder %s152_s1, %s214_s24  ;;  %p219_p11 = scmp.lt.s32.totalorder %s152_s1, %s152_s1 }
  0x20   :  { %v168_v8 = vsel %vm103_vm3, 1.0, %v264_v1  ;;  %vm106_vm4 = vcmp.lt.f32.partialorder %v105_v6, 1.0  ;;  %v108_v10 = vmul.f32 %v107_v7, %v104_v5  ;;  %v167_v11 = vadd.f32 -0.5, %v105_v6  ;;  %p220_p12 = scmp.lt.s32.totalorder %s218_s25, %s214_s24 }
  0x21   :  { %v126_v9 = vsel %vm113_vm2, %v168_v8, 0.0 }
  0x22   :  { %v127_v12 = vrot.slane %v126_v9, 4  ;;  %v110_v13 = vsel %vm106_vm4, %v108_v10, %v167_v11  ;;  %v123_v23 = vld [vmem:[#allocation8] sm:$0x1]  ;;  %v112_v28 = vld [vmem:[#allocation7] sm:$0x1]  ;;  %p221_p13 = por %p220_p12, %p219_p11 }
  0x23   :  { %v111_v15 = vsel %vm103_vm3, %v110_v13, 0.0 }
  0x24   :  { %v128_v14 = vadd.f32 %v127_v12, %v126_v9  ;;  %v114_v16 = vsel %vm113_vm2, %v111_v15, 0.0  ;;  %p222_p0 = pnand %p221_p13, %p215_p10 }
  0x25   :  { %v115_v18 = vrot.slane %v114_v16, 4 }
  0x26   :  { %v129_v17 = vrot.slane %v128_v14, 2 }
  0x27   :  { %v116_v20 = vadd.f32 %v115_v18, %v114_v16 }
  0x28   :  { %v130_v19 = vadd.f32 %v129_v17, %v128_v14 }
  0x29   :  { %v117_v22 = vrot.slane %v116_v20, 2 }
  0x2a   :  { %v131_v21 = vrot.slane %v130_v19, 1 }
  0x2b   :  { %v118_v25 = vadd.f32 %v117_v22, %v116_v20 }
  0x2c   :  { %v132_v24 = vadd.f32 %v131_v21, %v130_v19 }
  0x2d   :  { %v119_v27 = vrot.slane %v118_v25, 1 }
  0x2e   :  { %v133_v26 = vadd.f32 %v132_v24, %v123_v23 }
  0x2f   :  { %v120_v29 = vadd.f32 %v119_v27, %v118_v25 }
  0x30   :  { %134 = vst [vmem:[#allocation8] sm:$0x1] %v133_v26 }
  0x31   :  { %225 = shalt.err (!%p222_p0)
}
  0x32   :  { %154 = dma.vmem_to_hbm [thread:$0]  %s152_s1, 16, %s302_s3, [#allocation9]   ;;  %v121_v30 = vadd.f32 %v120_v29, %v112_v28 }
  0x33   :  { %s234_s28 = scalar_lea.vmem %s142_s23, 16  ;;  %s238_s29 = scalar_lea.vmem %s142_s23, 32 }
  0x34   :  { %122 = vst [vmem:[#allocation7] sm:$0x1] %v121_v30  ;;  %p235_p1 = scmp.ne.s32.totalorder %s142_s23, %s234_s28  ;;  %p239_p2 = scmp.lt.s32.totalorder %s142_s23, %s142_s23 }
  0x35   :  { %p240_p3 = scmp.lt.s32.totalorder %s238_s29, %s234_s28 }
  0x37   :  { %p241_p4 = por %p240_p3, %p239_p2 }
  0x39   :  { %p242_p5 = pnand %p241_p4, %p235_p1 }
  0x3b   :  { %245 = shalt.err (!%p242_p5)
}
  0x3c   :  { %144 = dma.vmem_to_hbm [thread:$0]  %s142_s23, 16, %s301_s2, [#allocation4]  }
  0x3d   :  { %258 = dma.done.wait [#allocation4], 16  }
  0x3e   :  { %259 = vsyncadd [#allocation4], 4294967280 }
  0x3f   :  { %260 = dma.done.wait [#allocation9], 16  }
  0x40   :  { %261 = vsyncadd [#allocation9], 4294967280 }
  0x41   :  { %161 = vsyncpa [#allocation3], 1 }
  0x42   :  { %162 = vsyncpa [#allocation6], 1 }
  0x43   :  { %163 = vsyncpa [#allocation4], 1 }
  0x44   :  { %164 = vsyncpa [#allocation9], 1 }

</bundles_post_ra>
